<compile_context>
chip_gen: v5e
topology: v5e:2x2
jax: 0.10.0
libtpu: 0.0.40
codegen_flags: <defaults>
</compile_context>

<pallas_src>
import math
from functools import partial

import jax
import jax.numpy as jnp
from jax.experimental import pallas as pl
from jax.experimental.pallas import tpu as pltpu


# ----------------------------- config ---------------------------------------
class Config:
    hidden_size = 32
    num_heads = 4
    hierarchical_projs = 2
    use_hierarchical_attention = True
    dropout = 0.1  # unused at inference (p=0 in eval mode)


LN_EPS = 1e-5


# ----------------------------- Pallas kernel --------------------------------
def hda_kernel(x_ref, wqkv_ref, bqkv_ref, wo_ref, bo_ref, gamma_ref, beta_ref,
               o_ref, *, num_heads, head_dim):
    # x_ref: (L, D) -- one sequence per grid step.
    L, D = x_ref.shape
    H, d = num_heads, head_dim
    G = 3 * H                                     # fused (q|k|v) x heads

    x2d = x_ref[...].astype(jnp.float32)          # (L, D)

    # ---- fused, head-major q/k/v projection: ONE batched dot_general -------
    # wqkv_ref: (3H, D, d); scale folded into the q slice, hierarchical chain
    # folded into the k/v slices on the host.
    xb = jnp.broadcast_to(x2d[None, :, :], (G, L, D))               # (3H, L, D)
    qkv = jnp.einsum("gld,gde->gle", xb, wqkv_ref[...],
                     preferred_element_type=jnp.float32) + bqkv_ref[...]  # (3H, L, d)

    # Leading-dim slices only -- no lane-dim extraction.
    q = qkv[0:H]                                  # (H, L, d)
    k = qkv[H:2 * H]                              # (H, L, d)
    v = qkv[2 * H:3 * H]                          # (H, L, d)

    # ---- attention, batched over heads (scale pre-folded into Wq) ----------
    s = jnp.einsum("hqd,hkd->hqk", q, k,
                   preferred_element_type=jnp.float32)              # (H, L, L)
    s = s - jnp.max(s, axis=-1, keepdims=True)
    p = jnp.exp(s)
    denom = jnp.sum(p, axis=-1, keepdims=True)                      # (H, L, 1)
    ho = jnp.einsum("hqk,hkd->hqd", p, v,
                    preferred_element_type=jnp.float32)             # (H, L, d)
    ho = ho * pl.reciprocal(denom, approx=True)                     # EUP vrcp

    # ---- output projection: batched (L,d)@(d,D) per head, reduce heads -----
    oh = jnp.einsum("hld,hde->hle", ho, wo_ref[...],
                    preferred_element_type=jnp.float32)             # (H, L, D)
    attn = jnp.sum(oh, axis=0)                                      # (L, D)

    # ---- residual + output bias + LayerNorm (fused epilogue) ---------------
    y = attn + x2d + bo_ref[...]
    mean = jnp.mean(y, axis=-1, keepdims=True)
    var = jnp.mean((y - mean) ** 2, axis=-1, keepdims=True)
    yn = (y - mean) * jax.lax.rsqrt(var + LN_EPS)
    o_ref[...] = (yn * gamma_ref[...] + beta_ref[...]).astype(o_ref.dtype)


# ----------------------------- host-side weight prep -------------------------
def _prepare_weights(params, cfg: Config):
    """Fold scale + hierarchical chain and rearrange weights head-major."""
    D = cfg.hidden_size
    H = cfg.num_heads
    d = D // H
    scale = 1.0 / math.sqrt(d)

    def to_heads(w_t, b):                          # (D, D), (1, D)
        w_h = w_t.reshape(D, H, d).transpose(1, 0, 2)   # (H, D, d)
        b_h = b.reshape(1, H, d).transpose(1, 0, 2)     # (H, 1, d)
        return w_h, b_h

    wq_h, bq_h = to_heads(params["wq_t"] * scale, params["bq"] * scale)
    wk_h, bk_h = to_heads(params["wk_t"], params["bk"])
    wv_h, bv_h = to_heads(params["wv_t"], params["bv"])

    if cfg.use_hierarchical_attention:
        # Compose the chain:  z -> z @ M + c   (exact algebra).
        m = jnp.eye(d, dtype=wk_h.dtype)
        c = jnp.zeros((1, d), dtype=wk_h.dtype)
        for p in range(cfg.hierarchical_projs):
            m = m @ params["wp_t"][p]
            c = c @ params["wp_t"][p] + params["bp"][p]
        wk_h = wk_h @ m                            # (H, D, d)
        bk_h = bk_h @ m + c                        # (H, 1, d)
        wv_h = wv_h @ m
        bv_h = bv_h @ m + c

    w_qkv = jnp.concatenate([wq_h, wk_h, wv_h], axis=0)   # (3H, D, d)
    b_qkv = jnp.concatenate([bq_h, bk_h, bv_h], axis=0)   # (3H, 1, d)
    wo_h = params["wo_t"].reshape(H, d, D)                 # (H, d, D)
    return w_qkv, b_qkv, wo_h


# ----------------------------- wrapper ---------------------------------------
def hierarchical_domain_attention(x, params, cfg: Config):
    # TODO(synk): optional attention mask is not plumbed; mask=None inference path only.
    # NOTE: bf16 MXU inputs (perf rec for v6e/v7x) skipped at these tiny shapes
    # to preserve exact f32 agreement with the reference; flip dtypes here for
    # large batch/seq.
    B, L, D = x.shape
    H = cfg.num_heads
    d = D // H

    w_qkv, b_qkv, wo_h = _prepare_weights(params, cfg)
    x2d = x.reshape(B * L, D)

    kernel = partial(hda_kernel, num_heads=H, head_dim=d)

    def const_spec(shape):
        zeros = (0,) * len(shape)
        return pl.BlockSpec(shape, lambda b: zeros)   # resident, never re-DMA'd

    out2d = pl.pallas_call(
        kernel,
        out_shape=jax.ShapeDtypeStruct((B * L, D), x.dtype),
        grid_spec=pltpu.PrefetchScalarGridSpec(
            num_scalar_prefetch=0,
            grid=(B,),                                       # one sequence / step
            in_specs=[
                pl.BlockSpec((L, D), lambda b: (b, 0)),      # x, sequence b
                const_spec((3 * H, D, d)),                   # fused head-major W_qkv
                const_spec((3 * H, 1, d)),                   # fused b_qkv
                const_spec((H, d, D)),                       # head-major Wo
                const_spec((1, D)),                          # bo
                const_spec((1, D)),                          # gamma
                const_spec((1, D)),                          # beta
            ],
            out_specs=pl.BlockSpec((L, D), lambda b: (b, 0)),
        ),
        compiler_params=pltpu.CompilerParams(
            dimension_semantics=("parallel",)),              # shards batch on v7x
    )(x2d, w_qkv, b_qkv, wo_h, params["bo"], params["gamma"], params["beta"])

    return out2d.reshape(B, L, D)


# ----------------------------- pure-JAX reference -----------------------------
def reference(x, params, cfg: Config):
    B, L, D = x.shape
    H = cfg.num_heads
    d = D // H

    q = x @ params["wq_t"] + params["bq"]
    k = x @ params["wk_t"] + params["bk"]
    v = x @ params["wv_t"] + params["bv"]

    q = q.reshape(B, L, H, d).transpose(0, 2, 1, 3)
    k = k.reshape(B, L, H, d).transpose(0, 2, 1, 3)
    v = v.reshape(B, L, H, d).transpose(0, 2, 1, 3)

    if cfg.use_hierarchical_attention:
        for p in range(cfg.hierarchical_projs):
            k = k @ params["wp_t"][p] + params["bp"][p]
            v = v @ params["wp_t"][p] + params["bp"][p]

    scale = 1.0 / math.sqrt(d)
    s = jnp.einsum("bhqd,bhkd->bhqk", q, k) * scale
    a = jax.nn.softmax(s, axis=-1)
    o = jnp.einsum("bhqk,bhkd->bhqd", a, v)
    o = o.transpose(0, 2, 1, 3).reshape(B, L, D)
    o = o @ params["wo_t"] + params["bo"]
    y = x + o
    mean = jnp.mean(y, axis=-1, keepdims=True)
    var = jnp.mean((y - mean) ** 2, axis=-1, keepdims=True)
    yn = (y - mean) * jax.lax.rsqrt(var + LN_EPS)
    return yn * params["gamma"] + params["beta"]


# ----------------------------- param init ------------------------------------
def init_params(key, cfg: Config):
    D = cfg.hidden_size
    d = D // cfg.num_heads
    P = cfg.hierarchical_projs
    ks = jax.random.split(key, 10)
    n = lambda k, shape: (0.02 * jax.random.normal(k, shape)).astype(jnp.float32)
    return {
        # weights stored pre-transposed: y = x @ W_t + b
        "wq_t": n(ks[0], (D, D)), "bq": n(ks[1], (1, D)),
        "wk_t": n(ks[2], (D, D)), "bk": n(ks[3], (1, D)),
        "wv_t": n(ks[4], (D, D)), "bv": n(ks[5], (1, D)),
        "wp_t": n(ks[6], (P, d, d)), "bp": n(ks[7], (P, 1, d)),
        "wo_t": n(ks[8], (D, D)), "bo": n(ks[9], (1, D)),
        "gamma": jnp.ones((1, D), jnp.float32),
        "beta": jnp.zeros((1, D), jnp.float32),
    }


# ----------------------------- main -------------------------------------------
if __name__ == "__main__":
    cfg = Config()
    B, L, D = 2, 8, cfg.hidden_size

    key = jax.random.PRNGKey(0)
    kx, kp = jax.random.split(key)
    x = jax.random.normal(kx, (B, L, D), dtype=jnp.float32)
    params = init_params(kp, cfg)

    out = jax.block_until_ready(hierarchical_domain_attention(x, params, cfg))
    ref = jax.block_until_ready(reference(x, params, cfg))

    assert out.shape == (B, L, D)
    max_err = jnp.max(jnp.abs(out - ref))
    assert jnp.allclose(out, ref, atol=2e-4, rtol=2e-4), f"max abs err = {max_err}"

    print("KERNEL_OK")
</pallas_src>

<mosaic_0001>
module attributes {stable_mosaic.version = 11 : i64} {
  func.func @hda_kernel(%arg0: i32, %arg1: memref<8x32xf32, #tpu.memory_space<vmem>>, %arg2: memref<12x32x8xf32, #tpu.memory_space<vmem>>, %arg3: memref<12x1x8xf32, #tpu.memory_space<vmem>>, %arg4: memref<4x8x32xf32, #tpu.memory_space<vmem>>, %arg5: memref<1x32xf32, #tpu.memory_space<vmem>>, %arg6: memref<1x32xf32, #tpu.memory_space<vmem>>, %arg7: memref<1x32xf32, #tpu.memory_space<vmem>>, %arg8: memref<8x32xf32, #tpu.memory_space<vmem>>) attributes {dimension_semantics = [#tpu.dimension_semantics<parallel>], iteration_bounds = array<i64: 2>, scalar_prefetch = 0 : i64, scratch_operands = 0 : i64, tpu.core_type = #tpu.core_type<tc>, window_params = [{transform_indices = @transform_0, window_bounds = array<i64: 8, 32>}, {pipeline_mode = #tpu.pipeline_mode<synchronous>, transform_indices = @transform_1, window_bounds = array<i64: 12, 32, 8>}, {pipeline_mode = #tpu.pipeline_mode<synchronous>, transform_indices = @transform_2, window_bounds = array<i64: 12, 1, 8>}, {pipeline_mode = #tpu.pipeline_mode<synchronous>, transform_indices = @transform_3, window_bounds = array<i64: 4, 8, 32>}, {pipeline_mode = #tpu.pipeline_mode<synchronous>, transform_indices = @transform_4, window_bounds = array<i64: 1, 32>}, {pipeline_mode = #tpu.pipeline_mode<synchronous>, transform_indices = @transform_5, window_bounds = array<i64: 1, 32>}, {pipeline_mode = #tpu.pipeline_mode<synchronous>, transform_indices = @transform_6, window_bounds = array<i64: 1, 32>}, {transform_indices = @transform_7, window_bounds = array<i64: 8, 32>}]} {
    %c0 = arith.constant 0 : index
    %c0_0 = arith.constant 0 : index
    %0 = vector.load %arg1[%c0, %c0_0] : memref<8x32xf32, #tpu.memory_space<vmem>>, vector<8x32xf32>
    %1 = vector.shape_cast %0 : vector<8x32xf32> to vector<1x8x32xf32>
    %2 = vector.shape_cast %1 : vector<1x8x32xf32> to vector<1x8x32xf32>
    %3 = vector.broadcast %2 : vector<1x8x32xf32> to vector<12x8x32xf32>
    %c0_1 = arith.constant 0 : index
    %c0_2 = arith.constant 0 : index
    %c0_3 = arith.constant 0 : index
    %4 = vector.load %arg2[%c0_1, %c0_2, %c0_3] : memref<12x32x8xf32, #tpu.memory_space<vmem>>, vector<12x32x8xf32>
    "tpu.trace_start"() <{level = 10 : i32, message = "gld,gde->gle"}> : () -> ()
    %cst = arith.constant dense<0.000000e+00> : vector<12x8x8xf32>
    %5 = tpu.matmul %3, %4, %cst {dimension_numbers = #tpu.dot_dimension_numbers<[2], [1], [1], [2], [0, 0, 0, 1, 1, 2], [0], [0]>} : vector<12x8x32xf32>, vector<12x32x8xf32>, vector<12x8x8xf32> -> vector<12x8x8xf32>
    "tpu.trace_stop"() : () -> ()
    %c0_4 = arith.constant 0 : index
    %c0_5 = arith.constant 0 : index
    %c0_6 = arith.constant 0 : index
    %6 = vector.load %arg3[%c0_4, %c0_5, %c0_6] : memref<12x1x8xf32, #tpu.memory_space<vmem>>, vector<12x1x8xf32>
    %7 = vector.broadcast %6 : vector<12x1x8xf32> to vector<12x8x8xf32>
    %8 = arith.addf %5, %7 : vector<12x8x8xf32>
    %9 = vector.extract_strided_slice %8 {offsets = [0, 0, 0], sizes = [4, 8, 8], strides = [1, 1, 1]} : vector<12x8x8xf32> to vector<4x8x8xf32>
    %10 = vector.extract_strided_slice %8 {offsets = [4, 0, 0], sizes = [4, 8, 8], strides = [1, 1, 1]} : vector<12x8x8xf32> to vector<4x8x8xf32>
    %11 = vector.extract_strided_slice %8 {offsets = [8, 0, 0], sizes = [4, 8, 8], strides = [1, 1, 1]} : vector<12x8x8xf32> to vector<4x8x8xf32>
    "tpu.trace_start"() <{level = 10 : i32, message = "hqd,hkd->hqk"}> : () -> ()
    %cst_7 = arith.constant dense<0.000000e+00> : vector<4x8x8xf32>
    %12 = tpu.matmul %9, %10, %cst_7 {dimension_numbers = #tpu.dot_dimension_numbers<[2], [2], [1], [1], [0, 0, 0, 1, 1, 1], [0], [0]>} : vector<4x8x8xf32>, vector<4x8x8xf32>, vector<4x8x8xf32> -> vector<4x8x8xf32>
    "tpu.trace_stop"() : () -> ()
    %cst_8 = arith.constant dense<0xFF800000> : vector<4x8xf32>
    %13 = vector.multi_reduction <maximumf>, %12, %cst_8 [2] : vector<4x8x8xf32> to vector<4x8xf32>
    %14 = vector.shape_cast %13 : vector<4x8xf32> to vector<4x8x1xf32>
    %15 = vector.broadcast %14 : vector<4x8x1xf32> to vector<4x8x8xf32>
    %16 = arith.subf %12, %15 : vector<4x8x8xf32>
    %17 = math.exp %16 : vector<4x8x8xf32>
    %cst_9 = arith.constant dense<0.000000e+00> : vector<4x8xf32>
    %18 = vector.multi_reduction <add>, %17, %cst_9 [2] : vector<4x8x8xf32> to vector<4x8xf32>
    %19 = vector.shape_cast %18 : vector<4x8xf32> to vector<4x8x1xf32>
    "tpu.trace_start"() <{level = 10 : i32, message = "hqk,hkd->hqd"}> : () -> ()
    %cst_10 = arith.constant dense<0.000000e+00> : vector<4x8x8xf32>
    %20 = tpu.matmul %17, %11, %cst_10 {dimension_numbers = #tpu.dot_dimension_numbers<[2], [1], [1], [2], [0, 0, 0, 1, 1, 2], [0], [0]>} : vector<4x8x8xf32>, vector<4x8x8xf32>, vector<4x8x8xf32> -> vector<4x8x8xf32>
    "tpu.trace_stop"() : () -> ()
    %21 = tpu.reciprocal %19 {approx = true} : vector<4x8x1xf32> -> vector<4x8x1xf32>
    %22 = vector.broadcast %21 : vector<4x8x1xf32> to vector<4x8x8xf32>
    %23 = arith.mulf %20, %22 : vector<4x8x8xf32>
    %c0_11 = arith.constant 0 : index
    %c0_12 = arith.constant 0 : index
    %c0_13 = arith.constant 0 : index
    %24 = vector.load %arg4[%c0_11, %c0_12, %c0_13] : memref<4x8x32xf32, #tpu.memory_space<vmem>>, vector<4x8x32xf32>
    "tpu.trace_start"() <{level = 10 : i32, message = "hld,hde->hle"}> : () -> ()
    %cst_14 = arith.constant dense<0.000000e+00> : vector<4x8x32xf32>
    %25 = tpu.matmul %23, %24, %cst_14 {dimension_numbers = #tpu.dot_dimension_numbers<[2], [1], [1], [2], [0, 0, 0, 1, 1, 2], [0], [0]>} : vector<4x8x8xf32>, vector<4x8x32xf32>, vector<4x8x32xf32> -> vector<4x8x32xf32>
    "tpu.trace_stop"() : () -> ()
    %cst_15 = arith.constant dense<0.000000e+00> : vector<8x32xf32>
    %26 = vector.multi_reduction <add>, %25, %cst_15 [0] : vector<4x8x32xf32> to vector<8x32xf32>
    %27 = arith.addf %26, %0 : vector<8x32xf32>
    %c0_16 = arith.constant 0 : index
    %c0_17 = arith.constant 0 : index
    %28 = vector.load %arg5[%c0_16, %c0_17] : memref<1x32xf32, #tpu.memory_space<vmem>>, vector<1x32xf32>
    %29 = vector.broadcast %28 : vector<1x32xf32> to vector<8x32xf32>
    %30 = arith.addf %27, %29 : vector<8x32xf32>
    %cst_18 = arith.constant dense<0.000000e+00> : vector<8xf32>
    %31 = vector.multi_reduction <add>, %30, %cst_18 [1] : vector<8x32xf32> to vector<8xf32>
    %32 = vector.shape_cast %31 : vector<8xf32> to vector<8x1xf32>
    %cst_19 = arith.constant 3.200000e+01 : f32
    %33 = vector.broadcast %cst_19 : f32 to vector<8x1xf32>
    %34 = arith.divf %32, %33 : vector<8x1xf32>
    %35 = vector.broadcast %34 : vector<8x1xf32> to vector<8x32xf32>
    %36 = arith.subf %30, %35 : vector<8x32xf32>
    %37 = arith.mulf %36, %36 : vector<8x32xf32>
    %cst_20 = arith.constant dense<0.000000e+00> : vector<8xf32>
    %38 = vector.multi_reduction <add>, %37, %cst_20 [1] : vector<8x32xf32> to vector<8xf32>
    %39 = vector.shape_cast %38 : vector<8xf32> to vector<8x1xf32>
    %cst_21 = arith.constant 3.200000e+01 : f32
    %40 = vector.broadcast %cst_21 : f32 to vector<8x1xf32>
    %41 = arith.divf %39, %40 : vector<8x1xf32>
    %42 = vector.broadcast %34 : vector<8x1xf32> to vector<8x32xf32>
    %43 = arith.subf %30, %42 : vector<8x32xf32>
    %cst_22 = arith.constant 9.99999974E-6 : f32
    %44 = vector.broadcast %cst_22 : f32 to vector<8x1xf32>
    %45 = arith.addf %41, %44 : vector<8x1xf32>
    %46 = math.rsqrt %45 : vector<8x1xf32>
    %47 = vector.broadcast %46 : vector<8x1xf32> to vector<8x32xf32>
    %48 = arith.mulf %43, %47 : vector<8x32xf32>
    %c0_23 = arith.constant 0 : index
    %c0_24 = arith.constant 0 : index
    %49 = vector.load %arg6[%c0_23, %c0_24] : memref<1x32xf32, #tpu.memory_space<vmem>>, vector<1x32xf32>
    %50 = vector.broadcast %49 : vector<1x32xf32> to vector<8x32xf32>
    %51 = arith.mulf %48, %50 : vector<8x32xf32>
    %c0_25 = arith.constant 0 : index
    %c0_26 = arith.constant 0 : index
    %52 = vector.load %arg7[%c0_25, %c0_26] : memref<1x32xf32, #tpu.memory_space<vmem>>, vector<1x32xf32>
    %53 = vector.broadcast %52 : vector<1x32xf32> to vector<8x32xf32>
    %54 = arith.addf %51, %53 : vector<8x32xf32>
    %c0_27 = arith.constant 0 : index
    %c0_28 = arith.constant 0 : index
    %55 = vector.load %arg8[%c0_27, %c0_28] : memref<8x32xf32, #tpu.memory_space<vmem>>, vector<8x32xf32>
    tpu.vector_store %arg8[%c0_27, %c0_28], %54 {strides = array<i32>} : memref<8x32xf32, #tpu.memory_space<vmem>>, vector<8x32xf32>,
    return
  }
  func.func @transform_0(%arg0: i32) -> (i32, i32) {
    %c0_i32 = arith.constant 0 : i32
    %c0_i32_0 = arith.constant 0 : i32
    return %arg0, %c0_i32 : i32, i32
  }
  func.func @transform_1(%arg0: i32) -> (i32, i32, i32) {
    %c0_i32 = arith.constant 0 : i32
    %c0_i32_0 = arith.constant 0 : i32
    %c0_i32_1 = arith.constant 0 : i32
    %c0_i32_2 = arith.constant 0 : i32
    return %c0_i32, %c0_i32_0, %c0_i32_1 : i32, i32, i32
  }
  func.func @transform_2(%arg0: i32) -> (i32, i32, i32) {
    %c0_i32 = arith.constant 0 : i32
    %c0_i32_0 = arith.constant 0 : i32
    %c0_i32_1 = arith.constant 0 : i32
    %c0_i32_2 = arith.constant 0 : i32
    return %c0_i32, %c0_i32_0, %c0_i32_1 : i32, i32, i32
  }
  func.func @transform_3(%arg0: i32) -> (i32, i32, i32) {
    %c0_i32 = arith.constant 0 : i32
    %c0_i32_0 = arith.constant 0 : i32
    %c0_i32_1 = arith.constant 0 : i32
    %c0_i32_2 = arith.constant 0 : i32
    return %c0_i32, %c0_i32_0, %c0_i32_1 : i32, i32, i32
  }
  func.func @transform_4(%arg0: i32) -> (i32, i32) {
    %c0_i32 = arith.constant 0 : i32
    %c0_i32_0 = arith.constant 0 : i32
    %c0_i32_1 = arith.constant 0 : i32
    return %c0_i32, %c0_i32_0 : i32, i32
  }
  func.func @transform_5(%arg0: i32) -> (i32, i32) {
    %c0_i32 = arith.constant 0 : i32
    %c0_i32_0 = arith.constant 0 : i32
    %c0_i32_1 = arith.constant 0 : i32
    return %c0_i32, %c0_i32_0 : i32, i32
  }
  func.func @transform_6(%arg0: i32) -> (i32, i32) {
    %c0_i32 = arith.constant 0 : i32
    %c0_i32_0 = arith.constant 0 : i32
    %c0_i32_1 = arith.constant 0 : i32
    return %c0_i32, %c0_i32_0 : i32, i32
  }
  func.func @transform_7(%arg0: i32) -> (i32, i32) {
    %c0_i32 = arith.constant 0 : i32
    %c0_i32_0 = arith.constant 0 : i32
    return %arg0, %c0_i32 : i32, i32
  }
}

</mosaic_0001>

<bundles_post_ra>
// kernel: tpu_custom_call.1
= control target key start
LH: loop header
LB: loop body
LE: loop exit
PB: predicated region body
PF: predicated region fallthrough
CT: control target
= control target key end

     0   :  { %12 = vsyncpa [#allocation3], 0  ;;  %s1642_s0 = inlined_call_operand.vmem [shape: f32[16,32], index: 0, kind: input, shape index: {}]   ;;  %s1643_s1 = inlined_call_operand.vmem [shape: f32[12,32,8], index: 1, kind: input, shape index: {}]   ;;  %s1644_s2 = inlined_call_operand.vmem [shape: f32[12,1,8], index: 2, kind: input, shape index: {}]   ;;  %s1645_s3 = inlined_call_operand.vmem [shape: f32[4,8,32], index: 3, kind: input, shape index: {}]   ;;  %s1646_s4 = inlined_call_operand.vmem [shape: f32[1,32], index: 4, kind: input, shape index: {}]   ;;  %s1647_s5 = inlined_call_operand.vmem [shape: f32[1,32], index: 5, kind: input, shape index: {}]   ;;  %s1648_s6 = inlined_call_operand.vmem [shape: f32[1,32], index: 6, kind: input, shape index: {}]   ;;  %s1649_s7 = inlined_call_operand.hbm [shape: f32[16,32], index: 7, kind: output, shape index: {}]  }
   0x1   :  { %14 = vsyncpa [#allocation3 + $0x1], 0  ;;  %s1298_s24 = smov 0   ;;  %s1300_s25 = smov 0  }
   0x2   :  { %s1302_s26 = smov 0   ;;  %s1304_s27 = smov 0  }
   0x3 LB: > { %s1319_s28 = sadd.s32 4294967295, %s1255_s27   ;;  %s1080_s29 = sadd.s32 4294967294, %s1255_s27   ;;  %s1255_s27 = sphi %s1304_s27, %s1655_s27   ;;  %s1251_s26 = sphi %s1302_s26, %s1654_s26   ;;  %s1247_s25 = sphi %s1300_s25, %s1653_s25   ;;  %s1243_s24 = sphi %s1298_s24, %s1652_s24  }
   0x4   : > { %s1323_s30 = sadd.s32 1, %s1255_s27   ;;  %s179_s8 = sadd.s32 1, %s1251_s26 }
   0x5   : > { %s176_s9 = ssub.s32 %s1255_s27, %s1323_s30  ;;  %p189_p0 = scmp.ne.s32.totalorder %s1251_s26, %s1247_s25 }
   0x6   : > { %p177_p1 = scmp.eq.s32.totalorder %s176_s9, 0  ;;  %p190_p2 = scmp.eq.s32.totalorder %s1319_s28, 1 }
   0x7   : > { %p195_p3 = scmp.ne.s32.totalorder %s1247_s25, %s1243_s24  ;;  %p196_p4 = scmp.eq.s32.totalorder %s1080_s29, 1 }
   0x8   : > { %s1334_s10 = scalar_select %p177_p1, %s1251_s26, %s179_s8  }
   0x9   : > { %p1336_p5 = por %p190_p2, %p189_p0  ;;  %p1340_p6 = por %p196_p4, %p195_p3 }
   0xa   : > { %p1083_p7 = scmp.ge.s32.totalorder %s1255_s27, 1  ;;  %p239_p8 = scmp.lt.s32.totalorder %s1255_s27, 3 }
   0xc   : > { %p240_p9 = pnand %p1083_p7, %p239_p8 }
   0xd   : > { %p270_p10 = scmp.lt.s32.totalorder (!%p240_p9), %s1319_s28, 1  ;;  %s1115_s29 = sshll.u32 (!%p240_p9), %s1319_s28, 3 }
   0xe   : > { %243 = sbr.rel (%p240_p9) target bundleno = 986 (0x3da), region = 48 }
  0x13   : > { %v278_v0 = vld [vmem:[%s1643_s1 + $0x18] sm:$0xff]  ;;  %v277_v3 = vld [vmem:[%s1643_s1 + $0x10] sm:$0xff]  ;;  %v276_v6 = vld [vmem:[%s1643_s1 + $0x8] sm:$0xff]  ;;  %s271_s15 = scalar_select %p270_p10, %s1319_s28, 1  ;;  %vm371_vm0 = vcmask 261120   ;;  %vm615_vm1 = vcmask 64512  }
  0x14   : > { %v286_v1 = vld [vmem:[%s1643_s1 + $0x58] sm:$0xff]  ;;  %387 = vmatpush.msra.mxu0 %v278_v0  ;;  %v285_v4 = vld [vmem:[%s1643_s1 + $0x50] sm:$0xff]  ;;  %v284_v7 = vld [vmem:[%s1643_s1 + $0x48] sm:$0xff] }
  0x15   : > { %v290_v2 = vld [vmem:[%s1643_s1 + $0x78] sm:$0xff]  ;;  %427 = vmatpush.msra.mxu2 %v286_v1  ;;  %v289_v5 = vld [vmem:[%s1643_s1 + $0x70] sm:$0xff]  ;;  %v288_v8 = vld [vmem:[%s1643_s1 + $0x68] sm:$0xff]  ;;  %s1085_s22 = sshll.u32 %s271_s15, 3 }
  0x16   : > { %447 = vmatpush.msra.mxu3 %v290_v2  ;;  %388 = vmatpush.msra.mxu0 %v277_v3  ;;  %v275_v9 = vld [vmem:[%s1643_s1] sm:$0xff]  ;;  %v282_v11 = vld [vmem:[%s1643_s1 + $0x38] sm:$0xff]  ;;  %s273_s16 = scalar_lea.vmem %s1642_s0, %s1085_s22  ;;  %v281_v17 = vld [vmem:[%s1643_s1 + $0x30] sm:$0xff]  ;;  %s267_s22 = sand.u32 1, %s1247_s25  }
  0x17   : > { %428 = vmatpush.msra.mxu2 %v285_v4  ;;  %v283_v10 = vld [vmem:[%s1643_s1 + $0x40] sm:$0xff]  ;;  %407 = vmatpush.msra.mxu1 %v282_v11  ;;  %v294_v14 = vld [vmem:[%s1643_s1 + $0x98] sm:$0xff]  ;;  %v293_v18 = vld [vmem:[%s1643_s1 + $0x90] sm:$0xff]  ;;  %s1084_s23 = sshll.u32 %s267_s22, 3  ;;  %s1006_s20 = scalar_lea.sflag [#allocation3], %s267_s22 }
  0x18   : > { %448 = vmatpush.msra.mxu3 %v289_v5  ;;  %389 = vmatpush.msra.mxu0 %v276_v6  ;;  %v287_v12 = vld [vmem:[%s1643_s1 + $0x60] sm:$0xff]  ;;  %v302_v15 = vld [vmem:[%s1643_s1 + $0xd8] sm:$0xff]  ;;  %v301_v19 = vld [vmem:[%s1643_s1 + $0xd0] sm:$0xff]  ;;  %s269_s18 = scalar_lea.vmem [#allocation2], %s1084_s23  ;;  %s1213_s23 = scalar_lea.hbm %s1649_s7, 16 }
  0x19   : > { %429 = vmatpush.msra.mxu2 %v284_v7  ;;  %v1390_v13 = vld [vmem:[%s273_s16] sm:$0xff]  ;;  %v306_v16 = vld [vmem:[%s1643_s1 + $0xf8] sm:$0xff]  ;;  %v305_v20 = vld [vmem:[%s1643_s1 + $0xf0] sm:$0xff]  ;;  %408 = vmatpush.msra.mxu1 %v281_v17  ;;  %s1016_s16 = scalar_lea.hbm %s1649_s7, %s1115_s29  ;;  %s1018_s28 = sshll.u32 %s269_s18, 4  ;;  %s1019_s28 = int_to_ptr.vmem [resolvable:$true] %s1018_s28 }
  0x1a   : > { %449 = vmatpush.msra.mxu3 %v288_v8  ;;  %390 = vmatpush.msra.mxu0 %v275_v9  ;;  %v280_v21 = vld [vmem:[%s1643_s1 + $0x28] sm:$0xff]  ;;  %v279_v25 = vld [vmem:[%s1643_s1 + $0x20] sm:$0xff]  ;;  %v298_v29 = vld [vmem:[%s1643_s1 + $0xb8] sm:$0xff]  ;;  %s1020_s19 = sshll.u32 %s1016_s16, 4  ;;  %s1021_s19 = int_to_ptr.hbm [resolvable:$true] %s1020_s19 }
  0x1b   : > { %430 = vmatpush.msra.mxu2 %v283_v10  ;;  %1086 = vmatmul.msk.f32.vlgmr.msra.gmra.mxu0 %vm371_vm0, %v1390_v13  ;;  %v292_v22 = vld [vmem:[%s1643_s1 + $0x88] sm:$0xff]  ;;  %v291_v26 = vld [vmem:[%s1643_s1 + $0x80] sm:$0xff]  ;;  %v310_v30 = vld [vmem:[%s1643_s1 + $0x118] sm:$0xff]  ;;  %s1207_s21 = sshra.s32 %s1021_s19, 4  ;;  %s1208_s21 = int_to_ptr.hbm [resolvable:$true] %s1207_s21 }
  0x1c   : > { %450 = vmatpush.msra.mxu3 %v287_v12  ;;  %1088 = vmatmul.msk.f32.vlgmr.msra.gmra.mxu2 %vm371_vm0, %v1390_v13  ;;  %v300_v23 = vld [vmem:[%s1643_s1 + $0xc8] sm:$0xff]  ;;  %v299_v27 = vld [vmem:[%s1643_s1 + $0xc0] sm:$0xff]  ;;  %v297_v31 = vld [vmem:[%s1643_s1 + $0xb0] sm:$0xff]  ;;  %s1209_s29 = scalar_lea.hbm %s1208_s21, 8  ;;  %p1214_p0 = scmp.lt.s32.totalorder %s1208_s21, %s1649_s7 }
  0x1d   : > { %1089 = vmatmul.msk.f32.vlgmr.msra.gmra.mxu3 %vm371_vm0, %v1390_v13  ;;  %467 = vmatpush.msrb.mxu0 %v294_v14  ;;  %v304_v24 = vld [vmem:[%s1643_s1 + $0xe8] sm:$0xff]  ;;  %v303_v28 = vld [vmem:[%s1643_s1 + $0xe0] sm:$0xff]  ;;  %v309_v34 = vld [vmem:[%s1643_s1 + $0x110] sm:$0xff]  ;;  %p1210_p11 = scmp.ne.s32.totalorder %s1208_s21, %s1209_s29  ;;  %p1215_p1 = scmp.lt.s32.totalorder %s1213_s23, %s1209_s29 }
  0x1e   : > { %507 = vmatpush.msrb.mxu2 %v302_v15  ;;  %527 = vmatpush.msrb.mxu3 %v306_v16  ;;  %v296_v32 = vld [vmem:[%s1643_s1 + $0xa8] sm:$0xff]  ;;  %v295_v33 = vld [vmem:[%s1643_s1 + $0xa0] sm:$0xff]  ;;  %v318_v36 = vld [vmem:[%s1643_s1 + $0x158] sm:$0xff] }
  0x1f   : > { %468 = vmatpush.msrb.mxu0 %v293_v18  ;;  %409 = vmatpush.msra.mxu1 %v280_v21  ;;  %v308_v35 = vld [vmem:[%s1643_s1 + $0x108] sm:$0xff]  ;;  %v322_v37 = vld [vmem:[%s1643_s1 + $0x178] sm:$0xff]  ;;  %v307_v38 = vld [vmem:[%s1643_s1 + $0x100] sm:$0xff]  ;;  %p1211_p12 = pnand %p1210_p11, %p1336_p5  ;;  %p1216_p2 = por %p1215_p1, %p1214_p0 }
  0x20   : > { %508 = vmatpush.msrb.mxu2 %v301_v19  ;;  %528 = vmatpush.msrb.mxu3 %v305_v20  ;;  %v314_v39 = vld [vmem:[%s1643_s1 + $0x138] sm:$0xff]  ;;  %v317_v40 = vld [vmem:[%s1643_s1 + $0x150] sm:$0xff]  ;;  %v316_v43 = vld [vmem:[%s1643_s1 + $0x148] sm:$0xff] }
  0x21   : > { %469 = vmatpush.msrb.mxu0 %v292_v22  ;;  %410 = vmatpush.msra.mxu1 %v279_v25  ;;  %v321_v41 = vld [vmem:[%s1643_s1 + $0x170] sm:$0xff]  ;;  %v320_v44 = vld [vmem:[%s1643_s1 + $0x168] sm:$0xff]  ;;  %v315_v46 = vld [vmem:[%s1643_s1 + $0x140] sm:$0xff]  ;;  %p1212_p13 = pneg %p1211_p12 }
  0x22   : > { %509 = vmatpush.msrb.mxu2 %v300_v23  ;;  %529 = vmatpush.msrb.mxu3 %v304_v24  ;;  %v313_v42 = vld [vmem:[%s1643_s1 + $0x130] sm:$0xff]  ;;  %v312_v45 = vld [vmem:[%s1643_s1 + $0x128] sm:$0xff]  ;;  %v319_v47 = vld [vmem:[%s1643_s1 + $0x160] sm:$0xff] }
  0x23   : > { %470 = vmatpush.msrb.mxu0 %v291_v26  ;;  %1087 = vmatmul.msk.f32.vlgmr.msra.gmra.mxu1 %vm371_vm0, %v1390_v13  ;;  %v311_v48 = vld [vmem:[%s1643_s1 + $0x120] sm:$0xff]  ;;  %v1166_v9 = vld [vmem:[%s1644_s2 + $0x8] ss:$0 sm:$0xff]  ;;  %v1167_v12 = vld [vmem:[%s1644_s2 + $0x9] ss:$0 sm:$0xff]  ;;  %p1217_p3 = pnand %p1216_p2, %p1212_p13 }
  0x24   : > { %510 = vmatpush.msrb.mxu2 %v299_v27  ;;  %530 = vmatpush.msrb.mxu3 %v303_v28  ;;  %v1162_v52 = vld [vmem:[%s1644_s2 + $0x4] ss:$0 sm:$0xff]  ;;  %v1158_v53 = vld [vmem:[%s1644_s2] ss:$0 sm:$0xff]  ;;  %v1163_v58 = vld [vmem:[%s1644_s2 + $0x6] ss:$0 sm:$0xff] }
  0x25   : > { %1090 = vmatmul.msk.f32.vlgmr.msrb.gmra.mxu0 %vm371_vm0, %v1390_v13  ;;  %1092 = vmatmul.msk.f32.vlgmr.msrb.gmra.mxu2 %vm371_vm0, %v1390_v13  ;;  %v1164_v59 = vld [vmem:[%s1644_s2 + $0x7] ss:$0 sm:$0xff]  ;;  %v1165_v60 = vld [vmem:[%s1644_s2 + $0x5] ss:$0 sm:$0xff]  ;;  %v1159_v61 = vld [vmem:[%s1644_s2 + $0x2] ss:$0 sm:$0xff] }
  0x26   : > { %1093 = vmatmul.msk.f32.vlgmr.msrb.gmra.mxu3 %vm371_vm0, %v1390_v13  ;;  %487 = vmatpush.msrb.mxu1 %v298_v29  ;;  %v1161_v62 = vld [vmem:[%s1644_s2 + $0x1] ss:$0 sm:$0xff]  ;;  %v1160_v0 = vld [vmem:[%s1644_s2 + $0x3] ss:$0 sm:$0xff]  ;;  %v1168_v16 = vld [vmem:[%s1644_s2 + $0xa] ss:$0 sm:$0xff] }
  0x27   : > { %547 = vmatpush.msra.mxu0 %v310_v30  ;;  %587 = vmatpush.msra.mxu2 %v318_v36  ;;  %v1169_v17 = vld [vmem:[%s1644_s2 + $0xb] ss:$0 sm:$0xff] }
  0x28   : > { %488 = vmatpush.msrb.mxu1 %v297_v31  ;;  %607 = vmatpush.msra.mxu3 %v322_v37 }
  0x29   : > { %548 = vmatpush.msra.mxu0 %v309_v34  ;;  %588 = vmatpush.msra.mxu2 %v317_v40 }
  0x2a   : > { %489 = vmatpush.msrb.mxu1 %v296_v32  ;;  %608 = vmatpush.msra.mxu3 %v321_v41 }
  0x2b   : > { %549 = vmatpush.msra.mxu0 %v308_v35  ;;  %589 = vmatpush.msra.mxu2 %v316_v43 }
  0x2c   : > { %490 = vmatpush.msrb.mxu1 %v295_v33  ;;  %609 = vmatpush.msra.mxu3 %v320_v44 }
  0x2d   : > { %1091 = vmatmul.msk.f32.vlgmr.msrb.gmra.mxu1 %vm371_vm0, %v1390_v13  ;;  %550 = vmatpush.msra.mxu0 %v307_v38 }
  0x2e   : > { %1094 = vmatmul.msk.f32.vlgmr.msra.gmra.mxu0 %vm371_vm0, %v1390_v13  ;;  %567 = vmatpush.msra.mxu1 %v314_v39 }
  0x2f   : > { %590 = vmatpush.msra.mxu2 %v315_v46  ;;  %610 = vmatpush.msra.mxu3 %v319_v47 }
  0x30   : > { %568 = vmatpush.msra.mxu1 %v313_v42  ;;  %1096 = vmatmul.msk.f32.vlgmr.msra.gmra.mxu2 %vm371_vm0, %v1390_v13 }
  0x31   : > { %1097 = vmatmul.msk.f32.vlgmr.msra.gmra.mxu3 %vm371_vm0, %v1390_v13 }
  0x32   : > { %569 = vmatpush.msra.mxu1 %v312_v45 }
  0x34   : > { %570 = vmatpush.msra.mxu1 %v311_v48 }
  0x35   : > { %1095 = vmatmul.msk.f32.vlgmr.msra.gmra.mxu1 %vm371_vm0, %v1390_v13 }
  0x98   : > { %v392_v49 = vpop.f32.mrf.mxu0 }
  0x99   : > { %v393_v57 = vadd.f32 %v1158_v53, %v392_v49 }
  0x9f   : > { %v432_v50 = vpop.f32.mrf.mxu2 }
  0xa0   : > { %v452_v51 = vpop.f32.mrf.mxu3  ;;  %v412_v54 = vpop.f32.mrf.mxu1  ;;  %v433_v6 = vadd.f32 %v1159_v61, %v432_v50  ;;  %v856_v50 = vld [vmem:[%s1645_s3] sm:$0xff] }
  0xa1   : > { %v413_v7 = vadd.f32 %v1161_v62, %v412_v54  ;;  %v453_v8 = vadd.f32 %v1160_v0, %v452_v51  ;;  %v857_v51 = vld [vmem:[%s1645_s3 + $0x8] sm:$0xff]  ;;  %v859_v54 = vld [vmem:[%s1645_s3 + $0x18] sm:$0xff] }
  0xa2   : > { %v472_v55 = vpop.f32.mrf.mxu0 }
  0xa3   : > { %v473_v56 = vadd.f32 %v1162_v52, %v472_v55  ;;  %v858_v52 = vld [vmem:[%s1645_s3 + $0x10] sm:$0xff] }
  0xa5   : > { %1098 = vmatpush.xpose.msk.msrb.mxu0 %vm615_vm1, %v473_v56 }
  0xa8   : > { %v512_v63 = vpop.f32.mrf.mxu2  ;;  %1099 = vmatmul.msk.f32.vlgmr.msrb.gmra.mxu0 %vm615_vm1, %v393_v57 }
  0xa9   : > { %v513_v1 = vadd.f32 %v1163_v58, %v512_v63  ;;  %v532_v2 = vpop.f32.mrf.mxu3 }
  0xaa   : > { %v533_v3 = vadd.f32 %v1164_v59, %v532_v2  ;;  %v492_v4 = vpop.f32.mrf.mxu1 }
  0xab   : > { %v493_v5 = vadd.f32 %v1165_v60, %v492_v4  ;;  %1102 = vmatpush.xpose.msk.msrb.mxu2 %vm615_vm1, %v513_v1  ;;  %v552_v10 = vpop.f32.mrf.mxu0 }
  0xac   : > { %1104 = vmatpush.xpose.msk.msrb.mxu3 %vm615_vm1, %v533_v3  ;;  %v553_v11 = vadd.f32 %v1166_v9, %v552_v10 }
  0xad   : > { %1100 = vmatpush.xpose.msk.msrb.mxu1 %vm615_vm1, %v493_v5 }
  0xae   : > { %1103 = vmatmul.msk.f32.vlgmr.msrb.gmra.mxu2 %vm615_vm1, %v433_v6  ;;  %774 = vmatpush.msra.mxu0 %v553_v11 }
  0xaf   : > { %1105 = vmatmul.msk.f32.vlgmr.msrb.gmra.mxu3 %vm615_vm1, %v453_v8 }
  0xb0   : > { %1101 = vmatmul.msk.f32.vlgmr.msrb.gmra.mxu1 %vm615_vm1, %v413_v7  ;;  %878 = vmatpush.msrb.mxu0 %v856_v50 }
  0xb2   : > { %v572_v14 = vpop.f32.mrf.mxu1 }
  0xb3   : > { %v573_v15 = vadd.f32 %v1167_v12, %v572_v14  ;;  %v592_v18 = vpop.f32.mrf.mxu2 }
  0xb4   : > { %v593_v19 = vadd.f32 %v1168_v16, %v592_v18  ;;  %v612_v20 = vpop.f32.mrf.mxu3  ;;  %v1170_v18 = vld [vmem:[%s1646_s4] ss:$0 sm:$0xff] }
  0xb5   : > { %797 = vmatpush.msra.mxu1 %v573_v15  ;;  %v613_v21 = vadd.f32 %v1169_v17, %v612_v20 }
  0xb6   : > { %820 = vmatpush.msra.mxu2 %v593_v19 }
  0xb7   : > { %843 = vmatpush.msra.mxu3 %v613_v21  ;;  %901 = vmatpush.msrb.mxu1 %v857_v51 }
  0xb8   : > { %924 = vmatpush.msrb.mxu2 %v858_v52 }
  0xb9   : > { %947 = vmatpush.msrb.mxu3 %v859_v54 }
 0x125   : > { %v639_v22 = vpop.f32.mrf.mxu0 }
 0x126   : > { %v720_v23 = vsel %vm615_vm1, %v639_v22, -inf }
 0x127   : > { %721 = vmax.xlane.f32.xlu1 %v720_v23 }
 0x12d   : > { %v665_v24 = vpop.f32.mrf.mxu1 }
 0x12e   : > { %v723_v25 = vsel %vm615_vm1, %v665_v24, -inf }
 0x12f   : > { %724 = vmax.xlane.f32.xlu1 %v723_v25 }
 0x131   : > { %v691_v26 = vpop.f32.mrf.mxu2 }
 0x132   : > { %v726_v27 = vsel %vm615_vm1, %v691_v26, -inf  ;;  %v717_v28 = vpop.f32.mrf.mxu3 }
 0x133   : > { %727 = vmax.xlane.f32.xlu0 %v726_v27  ;;  %v729_v29 = vsel %vm615_vm1, %v717_v28, -inf }
 0x13b   : > { %730 = vmax.xlane.f32.xlu0 %v729_v29 }
 0x19a   : > { %v722_v30 = vpop.xlane.xlu1 %721 }
 0x19b   : > { %v732_v31 = vsub.f32 %v639_v22, %v722_v30  ;;  %v1257_v22 = vmov 32.0  }
 0x19d   : > { %v736_v32 = vmul.f32 1.442695, %v732_v31 }
 0x19f   : > { %1173 = vpow2.f32 %v736_v32 }
 0x1a2   : > { %v725_v33 = vpop.xlane.xlu1 %724 }
 0x1a3   : > { %v733_v34 = vsub.f32 %v665_v24, %v725_v33 }
 0x1a5   : > { %v1174_v35 = vpop.eup %1173  ;;  %v738_v36 = vmul.f32 1.442695, %v733_v34 }
 0x1a6   : > { %v728_v37 = vpop.xlane.xlu0 %727  ;;  %1106 = vmatmul.msk.f32.vlgmr.msra.gmra.mxu0 %vm615_vm1, %v1174_v35  ;;  %v744_v38 = vsel %vm615_vm1, %v1174_v35, 0.0 }
 0x1a7   : > { %1175 = vpow2.f32 %v738_v36  ;;  %v734_v39 = vsub.f32 %v691_v26, %v728_v37  ;;  %745 = vadd.xlane.f32.xlu0 %v744_v38 }
 0x1a9   : > { %v740_v40 = vmul.f32 1.442695, %v734_v39 }
 0x1ab   : > { %1177 = vpow2.f32 %v740_v40 }
 0x1ad   : > { %v1176_v41 = vpop.eup %1175 }
 0x1ae   : > { %v731_v42 = vpop.xlane.xlu0 %730  ;;  %1107 = vmatmul.msk.f32.vlgmr.msra.gmra.mxu1 %vm615_vm1, %v1176_v41  ;;  %v747_v43 = vsel %vm615_vm1, %v1176_v41, 0.0 }
 0x1af   : > { %v735_v44 = vsub.f32 %v717_v28, %v731_v42  ;;  %748 = vadd.xlane.f32.xlu1 %v747_v43  ;;  %v1171_v42 = vld [vmem:[%s1647_s5] ss:$0 sm:$0xff] }
 0x1b1   : > { %v1178_v45 = vpop.eup %1177  ;;  %v742_v46 = vmul.f32 1.442695, %v735_v44 }
 0x1b2   : > { %1108 = vmatmul.msk.f32.vlgmr.msra.gmra.mxu2 %vm615_vm1, %v1178_v45  ;;  %v750_v47 = vsel %vm615_vm1, %v1178_v45, 0.0  ;;  %v1172_v45 = vld [vmem:[%s1648_s6] ss:$0 sm:$0xff] }
 0x1b3   : > { %1179 = vpow2.f32 %v742_v46  ;;  %751 = vadd.xlane.f32.xlu2 %v750_v47 }
 0x1b9   : > { %v1180_v48 = vpop.eup %1179 }
 0x1ba   : > { %1109 = vmatmul.msk.f32.vlgmr.msra.gmra.mxu3 %vm615_vm1, %v1180_v48  ;;  %v753_v49 = vsel %vm615_vm1, %v1180_v48, 0.0 }
 0x1bb   : > { %754 = vadd.xlane.f32.xlu2 %v753_v49 }
 0x21a   : > { %v746_v53 = vpop.xlane.xlu0 %745 }
 0x21b   : > { %1181 = vrcp.f32 %v746_v53 }
 0x221   : > { %v1182_v56 = vpop.eup %1181 }
 0x222   : > { %v749_v55 = vpop.xlane.xlu1 %748 }
 0x223   : > { %v776_v57 = vpop.f32.mrf.mxu0  ;;  %1183 = vrcp.f32 %v749_v55 }
 0x224   : > { %v852_v58 = vmul.f32 %v1182_v56, %v776_v57 }
 0x226   : > { %1110 = vmatmul.msk.f32.vlgmr.msrb.gmra.mxu0 %vm615_vm1, %v852_v58  ;;  %v752_v59 = vpop.xlane.xlu2 %751 }
 0x227   : > { %1185 = vrcp.f32 %v752_v59 }
 0x229   : > { %v1184_v60 = vpop.eup %1183 }
 0x22b   : > { %v799_v61 = vpop.f32.mrf.mxu1 }
 0x22c   : > { %v853_v62 = vmul.f32 %v1184_v60, %v799_v61 }
 0x22d   : > { %v1186_v0 = vpop.eup %1185 }
 0x22e   : > { %1111 = vmatmul.msk.f32.vlgmr.msrb.gmra.mxu1 %vm615_vm1, %v853_v62  ;;  %v755_v63 = vpop.xlane.xlu2 %754 }
 0x22f   : > { %1187 = vrcp.f32 %v755_v63 }
 0x230   : > { %1189 = vrcp.f32 %v1257_v22 }
 0x235   : > { %v822_v1 = vpop.f32.mrf.mxu2  ;;  %v1188_v3 = vpop.eup %1187 }
 0x236   : > { %v854_v2 = vmul.f32 %v1186_v0, %v822_v1  ;;  %v1190_v23 = vpop.eup %1189 }
 0x237   : > { %v969_v24 = vmul.f32 32.0, %v1190_v23  ;;  %vm973_vm2 = vweird.f32 %v1190_v23 }
 0x238   : > { %1112 = vmatmul.msk.f32.vlgmr.msrb.gmra.mxu2 %vm615_vm1, %v854_v2 }
 0x239   : > { %v970_v25 = vsub.f32 1.0, %v969_v24 }
 0x23b   : > { %v971_v26 = vmul.f32 %v1190_v23, %v970_v25 }
 0x23d   : > { %v845_v4 = vpop.f32.mrf.mxu3  ;;  %v972_v27 = vadd.f32 %v1190_v23, %v971_v26 }
 0x23e   : > { %v855_v5 = vmul.f32 %v1188_v3, %v845_v4 }
 0x23f   : > { %v974_v28 = vsel %vm973_vm2, %v1190_v23, %v972_v27 }
 0x240   : > { %1113 = vmatmul.msk.f32.vlgmr.msrb.gmra.mxu3 %vm615_vm1, %v855_v5 }
 0x2a3   : > { %v880_v7 = vpop.f32.mrf.mxu0 }
 0x2a4   : > { %v952_v10 = vsel %vm371_vm0, %v880_v7, 0.0 }
 0x2ab   : > { %v903_v6 = vpop.f32.mrf.mxu1 }
 0x2ac   : > { %v953_v9 = vsel %vm371_vm0, %v903_v6, 0.0 }
 0x2ad   : > { %v954_v12 = vadd.f32 %v953_v9, %v952_v10 }
 0x2bb   : > { %v926_v8 = vpop.f32.mrf.mxu2 }
 0x2bc   : > { %v955_v11 = vsel %vm371_vm0, %v926_v8, 0.0 }
 0x2bd   : > { %v956_v14 = vadd.f32 %v955_v11, %v954_v12 }
 0x2c3   : > { %v949_v15 = vpop.f32.mrf.mxu3 }
 0x2c4   : > { %v957_v16 = vsel %vm371_vm0, %v949_v15, 0.0 }
 0x2c5   : > { %v958_v17 = vadd.f32 %v957_v16, %v956_v14 }
 0x2c7   : > { %v959_v19 = vadd.f32 %v958_v17, %v1390_v13 }
 0x2c9   : > { %v964_v20 = vadd.f32 %v1170_v18, %v959_v19 }
 0x2cb   : > { %v965_v21 = vsel %vm371_vm0, %v964_v20, 0.0 }
 0x2cc   : > { %966 = vadd.xlane.f32.xlu2 %v965_v21 }
 0x33f   : > { %v967_v29 = vpop.xlane.xlu2 %966 }
 0x340   : > { %v975_v30 = vmul.f32 %v974_v28, %v967_v29 }
 0x342   : > { %v976_v31 = vsub.f32 %v964_v20, %v975_v30 }
 0x344   : > { %v977_v32 = vmul.f32 %v976_v31, %v976_v31 }
 0x346   : > { %v978_v13 = vsel %vm371_vm0, %v977_v32, 0.0 }
 0x347   : > { %979 = vadd.xlane.f32.xlu0 %v978_v13 }
 0x3ba   : > { %v980_v33 = vpop.xlane.xlu0 %979 }
 0x3bb   : > { %v981_v34 = vmul.f32 %v980_v33, %v974_v28 }
 0x3bd   : > { %v982_v35 = vadd.f32 1e-05, %v981_v34 }
 0x3bf   : > { %1191 = vrsqrt.f32 %v982_v35  ;;  %vm989_vm4 = vweird.f32 %v982_v35 }
 0x3c5   : > { %v1192_v36 = vpop.eup %1191 }
 0x3c6   : > { %v984_v37 = vmul.f32 %v1192_v36, %v982_v35  ;;  %vm990_vm3 = vweird.f32 %v1192_v36 }
 0x3c7   : > { %vm991_vm5 = vmor %vm989_vm4, %vm990_vm3 }
 0x3c8   : > { %v985_v38 = vmul.f32 %v1192_v36, %v984_v37 }
 0x3ca   : > { %v986_v39 = vmul.f32 0.5, %v985_v38 }
 0x3cc   : > { %v987_v40 = vsub.f32 1.5, %v986_v39 }
 0x3ce   : > { %v988_v41 = vmul.f32 %v1192_v36, %v987_v40 }
 0x3d0   : > { %v992_v43 = vsel %vm991_vm5, %v1192_v36, %v988_v41 }
 0x3d1   : > { %v993_v44 = vmul.f32 %v992_v43, %v976_v31 }
 0x3d3   : > { %v998_v46 = vmul.f32 %v1171_v42, %v993_v44 }
 0x3d5   : > { %v1003_v47 = vadd.f32 %v1172_v45, %v998_v46 }
 0x3d7   : > { %1004 = vst.msk [vmem:[%s269_s18] sm:$0xff] %vm371_vm0, %v1003_v47 }
 0x3d8   : > { %1220 = shalt.err (!%p1217_p3)
}
 0x3d9   : > { %1118 = dma.vmem_to_hbm [thread:$0]  (%p1336_p5), %s1019_s28, 128, %s1021_s19, %s1006_s20  }
 0x3da PF: > { %p1124_p4 = scmp.ge.s32.totalorder %s1255_s27, 2  ;;  %s1032_s22 = sand.u32 1, %s1243_s24  }
 0x3db   : > { %s1033_s16 = scalar_lea.sflag [#allocation3], %s1032_s22 }
 0x3dc   : > { %p1121_p7 = pnand %p1124_p4, %p1340_p6 }
 0x3de   : > { %p1122_p8 = pneg %p1121_p7 }
 0x3e0   : > { %1238 = dma.done.wait (%p1122_p8), %s1033_s16, 128  }
 0x3e1   : > { %1240 = vsyncadd (%p1122_p8), %s1033_s16, 4294967168  ;;  %p17_p9 = scmp.ge.s32.totalorder %s1323_s30, 4   ;;  %s1652_s24 = smov %s1247_s25 }
 0x3e2   : > { %s1653_s25 = smov %s1251_s26  ;;  %s1654_s26 = smov %s1334_s10 }
 0x3e3   : > { %s1655_s27 = smov %s1323_s30  ;;  %19 = sbr.rel (!%p17_p9) target bundleno = 3 (0x3), region = 83 }
 0x3e8   :  { %1039 = vsyncpa [#allocation3], 1 }
 0x3e9   :  { %1041 = vsyncpa [#allocation3 + $0x1], 1 }

</bundles_post_ra>
